<compile_context>
chip_gen: v6e
topology: v6e:2x2x1
jax: 0.10.0
libtpu: 0.0.40
codegen_flags: <defaults>
</compile_context>

<pallas_src>
import jax
import jax.numpy as jnp
from jax.experimental import pallas as pl
from jax.experimental.pallas import tpu as pltpu


_TARGET_X_BUFFER_BYTES = 4 * 1024 * 1024   # per pipelined x buffer (2 in flight)
_R_CHUNK = 128                             # rows per in-kernel compute chunk
_F_CHUNK = 256                             # feature lanes per in-kernel compute chunk


def _round_up(x, m):
    return ((x + m - 1) // m) * m


def _logreg_kernel(x_ref, w_ref, b_ref, o_ref):
    # x_ref: (tm, F) VMEM; w_ref: (1, F) VMEM; b_ref: (1, 1) SMEM; o_ref: (1, tm) VMEM.
    tm, n_feat = x_ref.shape
    bias = b_ref[0, 0]

    # Static (fully unrolled) chunk loops: small live values, no dynamic slices.
    for r0 in range(0, tm, _R_CHUNK):
        rc = min(_R_CHUNK, tm - r0)
        acc = jnp.zeros((1, rc), dtype=jnp.float32)
        for f0 in range(0, n_feat, _F_CHUNK):
            fc = min(_F_CHUNK, n_feat - f0)
            xc = x_ref[r0:r0 + rc, f0:f0 + fc]        # (rc, fc), input dtype
            wc = w_ref[:, f0:f0 + fc]                 # (1, fc), broadcast over rows (VPU)
            prod = xc * wc                            # stays in input dtype
            # Transpose the small chunk so the batch index lands on lanes; the
            # sublane reduction then yields a lane-dense (1, rc) row directly
            # (no masked (rc, 1) column stores, no padded column buffers).
            acc = acc + jnp.sum(prod.T, axis=0, keepdims=True, dtype=jnp.float32)
        logits = acc + bias
        o_ref[:, r0:r0 + rc] = jax.nn.sigmoid(logits).astype(o_ref.dtype)


def _pick_tile_rows(batch, n_feat, itemsize, block_rows):
    # Per-row VMEM footprint is lane-padded to 128.
    padded_row = _round_up(n_feat, 128) * itemsize
    tm = _TARGET_X_BUFFER_BYTES // max(padded_row, 1)
    tm = max(8, min(tm, 32768))
    if block_rows is not None:
        tm = min(tm, max(8, _round_up(block_rows, 8)))
    b8 = _round_up(batch, 8)
    if tm >= b8:
        tm = b8
        # Whole batch fits in one tile: split it in two when it carries enough
        # data, so v7x's two TensorCores both stream half of x.
        if batch * n_feat * itemsize >= (1 << 20) and b8 >= 16:
            tm = _round_up(pl.cdiv(b8, 2), 8)
    return max(8, (tm // 8) * 8)


def logistic_regression(x, weight, bias, *, block_rows=None):
    """x: (B, F); weight: (1, F) (PyTorch nn.Linear layout); bias: (1,)."""
    batch, n_feat = x.shape
    itemsize = jnp.dtype(x.dtype).itemsize

    tm = _pick_tile_rows(batch, n_feat, itemsize, block_rows)
    b_pad = _round_up(batch, tm)
    if b_pad != batch:
        x = jnp.pad(x, ((0, b_pad - batch), (0, 0)))
    num_tiles = b_pad // tm

    w = weight.astype(x.dtype)                      # (1, F), resident in VMEM
    b_smem = bias.reshape(1, 1).astype(jnp.float32)  # scalar bias in SMEM

    out = pl.pallas_call(
        _logreg_kernel,
        out_shape=jax.ShapeDtypeStruct((num_tiles, 1, tm), x.dtype),
        grid_spec=pltpu.PrefetchScalarGridSpec(
            num_scalar_prefetch=0,
            grid=(num_tiles,),
            in_specs=[
                pl.BlockSpec((tm, n_feat), lambda i: (i, 0)),   # streamed x tile
                pl.BlockSpec((1, n_feat), lambda i: (0, 0)),    # resident weight row
                pl.BlockSpec(memory_space=pltpu.SMEM),          # bias scalar
            ],
            # Lane-dense output: one (1, tm) row per grid step.
            out_specs=pl.BlockSpec((None, 1, tm), lambda i: (i, 0, 0)),
        ),
        compiler_params=pltpu.CompilerParams(
            # Independent batch tiles -> shard across both TCs on v7x.
            dimension_semantics=("parallel",),
            # Raise v5e's 16 MiB scoped default; safe on v6e/v7x as well.
            vmem_limit_bytes=32 * 1024 * 1024,
        ),
    )(x, w, b_smem)

    y = out.reshape(b_pad, 1)
    return y[:batch] if b_pad != batch else y


if __name__ == "__main__":
    key = jax.random.PRNGKey(0)
    kx, kw, kb = jax.random.split(key, 3)

    batch = 8
    n_features = 32

    x = jax.random.normal(kx, (batch, n_features), dtype=jnp.float32)
    # Deterministic parameters (mimic nn.Linear(n_features, 1) shapes).
    weight = jax.random.normal(kw, (1, n_features), dtype=jnp.float32) * 0.1
    bias = jax.random.normal(kb, (1,), dtype=jnp.float32) * 0.1

    y = logistic_regression(x, weight, bias)
    jax.block_until_ready(y)

    y_ref = jax.nn.sigmoid(jnp.sum(x * weight, axis=-1, keepdims=True) + bias)
    assert y.shape == (batch, 1)
    assert jnp.allclose(y, y_ref, atol=1e-5), "mismatch vs reference"

    # Exercise the multi-tile / padded / ragged-chunk paths with a forced tile.
    x2 = jax.random.normal(jax.random.PRNGKey(1), (300, n_features), dtype=jnp.float32)
    y2 = logistic_regression(x2, weight, bias, block_rows=64)
    jax.block_until_ready(y2)
    y2_ref = jax.nn.sigmoid(jnp.sum(x2 * weight, axis=-1, keepdims=True) + bias)
    assert y2.shape == (300, 1)
    assert jnp.allclose(y2, y2_ref, atol=1e-5), "mismatch vs reference (tiled)"

    print("KERNEL_OK")
</pallas_src>

<mosaic_0001>
module attributes {stable_mosaic.version = 11 : i64} {
  func.func @_logreg_kernel(%arg0: i32, %arg1: memref<8x32xf32, #tpu.memory_space<vmem>>, %arg2: memref<1x32xf32, #tpu.memory_space<vmem>>, %arg3: memref<1x1xf32, #tpu.memory_space<smem>>, %arg4: memref<1x1x8xf32, #tpu.memory_space<vmem>>) attributes {dimension_semantics = [#tpu.dimension_semantics<parallel>], iteration_bounds = array<i64: 1>, scalar_prefetch = 0 : i64, scratch_operands = 0 : i64, tpu.core_type = #tpu.core_type<tc>, window_params = [{transform_indices = @transform_0, window_bounds = array<i64: 8, 32>}, {pipeline_mode = #tpu.pipeline_mode<synchronous>, transform_indices = @transform_1, window_bounds = array<i64: 1, 32>}, {transform_indices = @transform_2, window_bounds = array<i64: 1, 1>}, {transform_indices = @transform_3, window_bounds = array<i64: 1, 1, 8>}]} {
    %c0 = arith.constant 0 : index
    %c0_0 = arith.constant 0 : index
    %0 = memref.load %arg3[%c0, %c0_0] : memref<1x1xf32, #tpu.memory_space<smem>>
    %cst = arith.constant 0.000000e+00 : f32
    %1 = vector.broadcast %cst : f32 to vector<1x8xf32>
    %c0_1 = arith.constant 0 : index
    %c0_2 = arith.constant 0 : index
    %2 = vector.load %arg1[%c0_1, %c0_2] : memref<8x32xf32, #tpu.memory_space<vmem>>, vector<8x32xf32>
    %c0_3 = arith.constant 0 : index
    %c0_4 = arith.constant 0 : index
    %3 = vector.load %arg2[%c0_3, %c0_4] : memref<1x32xf32, #tpu.memory_space<vmem>>, vector<1x32xf32>
    %4 = vector.broadcast %3 : vector<1x32xf32> to vector<8x32xf32>
    %5 = arith.mulf %2, %4 : vector<8x32xf32>
    %6 = tpu.transpose %5, [1, 0] : vector<8x32xf32> -> vector<32x8xf32>
    %cst_5 = arith.constant dense<0.000000e+00> : vector<8xf32>
    %7 = vector.multi_reduction <add>, %6, %cst_5 [0] : vector<32x8xf32> to vector<8xf32>
    %8 = vector.shape_cast %7 : vector<8xf32> to vector<1x8xf32>
    %9 = arith.addf %1, %8 : vector<1x8xf32>
    %10 = vector.broadcast %0 : f32 to vector<1x8xf32>
    %11 = arith.addf %9, %10 : vector<1x8xf32>
    %12 = arith.negf %11 : vector<1x8xf32>
    %13 = math.exp %12 : vector<1x8xf32>
    %cst_6 = arith.constant 1.000000e+00 : f32
    %14 = vector.broadcast %cst_6 : f32 to vector<1x8xf32>
    %15 = arith.addf %14, %13 : vector<1x8xf32>
    %16 = arith.divf %14, %15 : vector<1x8xf32>
    %c0_7 = arith.constant 0 : index
    %c0_8 = arith.constant 0 : index
    %c0_9 = arith.constant 0 : index
    %17 = vector.load %arg4[%c0_7, %c0_8, %c0_9] : memref<1x1x8xf32, #tpu.memory_space<vmem>>, vector<1x1x8xf32>
    %18 = vector.shape_cast %17 : vector<1x1x8xf32> to vector<1x8xf32>
    %19 = vector.shape_cast %16 : vector<1x8xf32> to vector<1x1x8xf32>
    tpu.vector_store %arg4[%c0_7, %c0_8, %c0_9], %19 {strides = array<i32>} : memref<1x1x8xf32, #tpu.memory_space<vmem>>, vector<1x1x8xf32>,
    return
  }
  func.func @transform_0(%arg0: i32) -> (i32, i32) {
    %c0_i32 = arith.constant 0 : i32
    %c0_i32_0 = arith.constant 0 : i32
    return %arg0, %c0_i32 : i32, i32
  }
  func.func @transform_1(%arg0: i32) -> (i32, i32) {
    %c0_i32 = arith.constant 0 : i32
    %c0_i32_0 = arith.constant 0 : i32
    %c0_i32_1 = arith.constant 0 : i32
    return %c0_i32, %c0_i32_0 : i32, i32
  }
  func.func @transform_2(%arg0: i32) -> (i32, i32) {
    %c0_i32 = arith.constant 0 : i32
    %c0_i32_0 = arith.constant 0 : i32
    %c0_i32_1 = arith.constant 0 : i32
    return %c0_i32, %c0_i32_0 : i32, i32
  }
  func.func @transform_3(%arg0: i32) -> (i32, i32, i32) {
    %c0_i32 = arith.constant 0 : i32
    %c0_i32_0 = arith.constant 0 : i32
    %c0_i32_1 = arith.constant 0 : i32
    return %arg0, %c0_i32, %c0_i32_0 : i32, i32, i32
  }
}

</mosaic_0001>

<bundles_post_ra>
// kernel: tpu_custom_call.1
= control target key start
LH: loop header
LB: loop body
LE: loop exit
PB: predicated region body
PF: predicated region fallthrough
CT: control target
= control target key end

     0   :  { %9 = vsyncpa [#allocation4], 0  ;;  %s197_s0 = inlined_call_operand.hbm [shape: f32[8,32], index: 0, kind: input, shape index: {}]   ;;  %s198_s1 = inlined_call_operand.vmem [shape: f32[1,32], index: 1, kind: input, shape index: {}]   ;;  %s199_s2 = inlined_call_operand.<no memory space> [shape: f32[1,1], index: 2, kind: input, shape index: {}]   ;;  %s200_s3 = inlined_call_operand.hbm [shape: f32[1,1,8], index: 3, kind: output, shape index: {}]  }
   0x1   :  { %10 = vsyncpa [#allocation5], 0  ;;  %s163_s12 = smov [#allocation3]  }
   0x2   :  { %s17_s13 = sshll.u32 %s163_s12, 4  ;;  %s18_s13 = int_to_ptr.vmem [resolvable:$true] %s17_s13 }
   0x3   :  { %s127_s14 = scalar_lea.vmem %s18_s13, 128  ;;  %p132_p1 = scmp.lt.s32.totalorder %s18_s13, %s18_s13 }
   0x4   :  { %p128_p0 = scmp.ne.s32.totalorder %s18_s13, %s127_s14  ;;  %p133_p2 = scmp.lt.s32.totalorder %s127_s14, %s127_s14 }
   0x6   :  { %p134_p3 = por %p133_p2, %p132_p1 }
   0x8   :  { %p135_p4 = pnand %p134_p3, %p128_p0 }
   0xa   :  { %138 = shalt.err (!%p135_p4)
}
   0xb   :  { %20 = dma.hbm_to_vmem [thread:$0]  %s197_s0, 128, %s18_s13, [#allocation4]  }
   0xc   :  { %159 = dma.done.wait [#allocation4], 128  }
   0xd   :  { %160 = vsyncadd [#allocation4], 4294967168  ;;  %v29_v0 = vld [vmem:[#allocation3] sm:$0xff]  ;;  %vm70_vm0 = vcmask 64512   ;;  %v85_v19 = vstv %s199_s2  ;;  %s164_s19 = smov [#allocation6]   ;;  %vm93_vm1 = vcmask 57344  }
   0xe   :  { %v110_v1 = vld [vmem:[%s198_s1] ss:$0 sm:$0xff]  ;;  %s101_s20 = sshll.u32 %s164_s19, 4  ;;  %s102_s20 = int_to_ptr.vmem [resolvable:$true] %s101_s20 }
   0xf   :  { %v37_v2 = vmul.f32 %v110_v1, %v29_v0  ;;  %s139_s21 = scalar_lea.vmem %s102_s20, 16  ;;  %s143_s22 = scalar_lea.vmem %s102_s20, 32 }
  0x10   :  { %p140_p5 = scmp.ne.s32.totalorder %s102_s20, %s139_s21  ;;  %p144_p6 = scmp.lt.s32.totalorder %s102_s20, %s102_s20 }
  0x11   :  { %38 = vxpose.xlu0.b32.start.end [1/1] (short) (narrow) %v37_v2, 32  ;;  %p145_p7 = scmp.lt.s32.totalorder %s143_s22, %s139_s21 }
  0x13   :  { %p146_p8 = por %p145_p7, %p144_p6 }
  0x15   :  { %p147_p9 = pnand %p146_p8, %p140_p5 }
  0x8d   :  { %v54_v3 = vpop.trf.xlu0 }
  0x8e   :  { %v71_v7 = vsel %vm70_vm0, %v54_v3, 0.0 }
  0x91   :  { %v55_v4 = vpop.trf.xlu0 }
  0x92   :  { %v72_v5 = vsel %vm70_vm0, %v55_v4, 0.0 }
  0x93   :  { %v73_v9 = vadd.f32 %v72_v5, %v71_v7 }
  0x95   :  { %v56_v6 = vpop.trf.xlu0 }
  0x96   :  { %v74_v8 = vsel %vm70_vm0, %v56_v6, 0.0 }
  0x97   :  { %v75_v10 = vadd.f32 %v74_v8, %v73_v9 }
  0x99   :  { %v57_v11 = vpop.trf.xlu0 }
  0x9a   :  { %v76_v12 = vsel %vm70_vm0, %v57_v11, 0.0 }
  0x9b   :  { %v77_v13 = vadd.f32 %v76_v12, %v75_v10 }
  0x9d   :  { %v78_v14 = vrot.slane %v77_v13, 4 }
  0x9f   :  { %v79_v15 = vadd.f32 %v78_v14, %v77_v13 }
  0xa1   :  { %v80_v16 = vrot.slane %v79_v15, 2 }
  0xa3   :  { %v81_v17 = vadd.f32 %v80_v16, %v79_v15 }
  0xa5   :  { %v82_v18 = vrot.slane %v81_v17, 1 }
  0xa7   :  { %v83_v20 = vadd.f32 %v82_v18, %v81_v17 }
  0xa9   :  { %v86_v21 = vadd.f32 %v85_v19, %v83_v20 }
  0xab   :  { %v111_v22 = vmul.f32 -1.442695, %v86_v21 }
  0xad   :  { %115 = vpow2.f32 %v111_v22 }
  0xba   :  { %v116_v23 = vpop.eup %115 }
  0xbb   :  { %v90_v24 = vadd.f32 1.0, %v116_v23 }
  0xbd   :  { %117 = vrcp.f32 %v90_v24 }
  0xca   :  { %v118_v25 = vpop.eup %117 }
  0xcb   :  { %94 = vst.msk [vmem:[#allocation6] sm:$0x1] %vm93_vm1, %v118_v25 }
  0xcc   :  { %150 = shalt.err (!%p147_p9)
}
  0xcd   :  { %104 = dma.vmem_to_hbm [thread:$0]  %s102_s20, 16, %s200_s3, [#allocation5]  }
  0xce   :  { %161 = dma.done.wait [#allocation5], 16  }
  0xcf   :  { %162 = vsyncadd [#allocation5], 4294967280 }
  0xd0   :  { %108 = vsyncpa [#allocation4], 1 }
  0xd1   :  { %109 = vsyncpa [#allocation5], 1 }

</bundles_post_ra>
